<compile_context>
chip_gen: v6e
topology: v6e:2x2x1
jax: 0.10.0
libtpu: 0.0.40
codegen_flags: <defaults>
</compile_context>

<pallas_src>
import functools

import jax
import jax.numpy as jnp
from jax.experimental import pallas as pl
from jax.experimental.pallas import tpu as pltpu

LANE = 128          # lane width: last-dim tiling granularity
SUBLANE_BF16 = 16   # bf16 sublane packing: pad batch rows to this


def _round_up(n: int, m: int) -> int:
    return ((n + m - 1) // m) * m


def policy_kernel(x_ref, w1_ref, b1_ref, w2_ref, b2_ref, o_ref, h_ref, *, b_actual):
    """One output-column tile of fused fc1 -> LeakyReLU -> fc2 -> softmax(dim=0).

    x_ref:  [B_p, S_p]   bf16 (VMEM-resident across column tiles)
    w1_ref: [S_p, F1_p]  bf16 (resident)
    b1_ref: [1, F1_p]    f32  (resident)
    w2_ref: [F1_p, TN]   bf16 (column tile)
    b2_ref: [1, TN]      f32  (column tile)
    o_ref:  [B_p, TN]    f32  output tile
    h_ref:  [B_p, F1_p]  bf16 VMEM scratch — fc1 activations, computed once.
    """
    j = pl.program_id(0)

    # fc1 + LeakyReLU once, on the first column tile only (scratch persists).
    @pl.when(j == 0)
    def _():
        h = jnp.dot(x_ref[...], w1_ref[...], preferred_element_type=jnp.float32)
        h = h + b1_ref[...]
        h = jnp.maximum(h, 0.01 * h)          # LeakyReLU(0.01) as mul+max (2 VALU ops)
        h_ref[...] = h.astype(h_ref.dtype)    # bf16 operand for the fc2 MXU pass

    # fc2 column tile: [B_p, F1_p](bf16) @ [F1_p, TN](bf16) -> f32 accumulate, + bias.
    z = jnp.dot(h_ref[...], w2_ref[...], preferred_element_type=jnp.float32) + b2_ref[...]

    # Mask the zero-padded batch rows out of the dim-0 softmax.
    row = jax.lax.broadcasted_iota(jnp.int32, z.shape, 0)
    z = jnp.where(row < b_actual, z, -jnp.inf)

    # Softmax over dim=0 (rows). Per-column independent -> column tiling is safe.
    m = jnp.max(z, axis=0, keepdims=True)
    e = jnp.exp(z - m)
    s = jnp.sum(e, axis=0, keepdims=True)
    o_ref[...] = (e / s).astype(o_ref.dtype)  # exact normalization (columns sum to 1)


def make_policy_forward(w1_t, b1, w2_t, b2, *, tn_max=512):
    """Pads/casts the weights once and returns a jitted forward(x: [B, S]) -> [B, F2].

    Weights are stored (in, out) so the hot path is y = x @ W + b.
    Semantics match the PyTorch module applied to a 2-D [B, state_dim] input:
    softmax is taken over dim=0 (the batch/row axis), per output column.
    """
    S, F1 = w1_t.shape
    F2 = w2_t.shape[1]
    S_p = _round_up(S, LANE)
    F1_p = _round_up(F1, LANE)
    F2_p = _round_up(F2, LANE)

    # One-time weight padding + bf16 cast (zero padding is exact for matmul/bias).
    w1_p = jnp.pad(w1_t.astype(jnp.float32), ((0, S_p - S), (0, F1_p - F1))).astype(jnp.bfloat16)
    b1_p = jnp.pad(b1.astype(jnp.float32), ((0, F1_p - F1),)).reshape(1, F1_p)
    w2_p = jnp.pad(w2_t.astype(jnp.float32), ((0, F1_p - F1), (0, F2_p - F2))).astype(jnp.bfloat16)
    b2_p = jnp.pad(b2.astype(jnp.float32), ((0, F2_p - F2),)).reshape(1, F2_p)

    TN = min(tn_max, F2_p)        # big lane-dense tiles; grid collapses to 1 step for small F2
    grid = (F2_p // TN,)

    @jax.jit
    def forward(x):
        B, s_in = x.shape
        assert s_in == S, f"expected state_dim={S}, got {s_in}"
        B_p = _round_up(B, SUBLANE_BF16)      # bf16 sublane packing for the MXU rows
        x_p = jnp.pad(x.astype(jnp.bfloat16), ((0, B_p - B), (0, S_p - S)))

        kernel = functools.partial(policy_kernel, b_actual=B)

        out_p = pl.pallas_call(
            kernel,
            out_shape=jax.ShapeDtypeStruct((B_p, F2_p), jnp.float32),
            grid=grid,
            in_specs=[
                pl.BlockSpec((B_p, S_p), lambda j: (0, 0)),     # x   (VMEM-resident)
                pl.BlockSpec((S_p, F1_p), lambda j: (0, 0)),    # w1  (VMEM-resident)
                pl.BlockSpec((1, F1_p), lambda j: (0, 0)),      # b1  (VMEM-resident)
                pl.BlockSpec((F1_p, TN), lambda j: (0, j)),     # w2 column tile (streamed)
                pl.BlockSpec((1, TN), lambda j: (0, j)),        # b2 column tile (streamed)
            ],
            out_specs=pl.BlockSpec((B_p, TN), lambda j: (0, j)),  # lane-dense store
            scratch_shapes=[pltpu.VMEM((B_p, F1_p), jnp.bfloat16)],  # fc1 activations
            compiler_params=pltpu.CompilerParams(
                # "arbitrary": the fc1 scratch (pl.when j==0) carries across column tiles.
                dimension_semantics=("arbitrary",),
                # Explicit budget: above v5e's 16 MiB default scoped limit, below v7x's
                # 64 MiB physical, so large-B batches stay portable across generations.
                vmem_limit_bytes=48 * 1024 * 1024,
            ),
        )(x_p, w1_p, b1_p, w2_p, b2_p)

        return out_p[:B, :F2]

    return forward


def reference_forward(x, w1_t, b1, w2_t, b2):
    h = x @ w1_t + b1
    h = jnp.where(h > 0, h, 0.01 * h)
    z = h @ w2_t + b2
    e = jnp.exp(z - jnp.max(z, axis=0, keepdims=True))
    return e / jnp.sum(e, axis=0, keepdims=True)


if __name__ == "__main__":
    # Small shapes consistent with the module: batch=2, state_dim=8, fc1=32, fc2=4.
    # (The wrapper accepts arbitrary B so a full rollout batch can be fused per call.)
    B, STATE_DIM, FC1, FC2 = 2, 8, 32, 4

    key = jax.random.PRNGKey(0)
    kx, k1, k2, k3, k4 = jax.random.split(key, 5)

    x = jax.random.normal(kx, (B, STATE_DIM), dtype=jnp.float32)

    # PyTorch-style uniform(-1/sqrt(fan_in), 1/sqrt(fan_in)) init, stored as (in, out).
    lim1 = 1.0 / (STATE_DIM ** 0.5)
    lim2 = 1.0 / (FC1 ** 0.5)
    w1_t = jax.random.uniform(k1, (STATE_DIM, FC1), minval=-lim1, maxval=lim1, dtype=jnp.float32)
    b1 = jax.random.uniform(k2, (FC1,), minval=-lim1, maxval=lim1, dtype=jnp.float32)
    w2_t = jax.random.uniform(k3, (FC1, FC2), minval=-lim2, maxval=lim2, dtype=jnp.float32)
    b2 = jax.random.uniform(k4, (FC2,), minval=-lim2, maxval=lim2, dtype=jnp.float32)

    forward = make_policy_forward(w1_t, b1, w2_t, b2)   # weights padded/cast once here
    out = forward(x)
    jax.block_until_ready(out)

    ref = reference_forward(x, w1_t, b1, w2_t, b2)
    assert out.shape == (B, FC2)
    # Tolerance accounts for bf16 GEMM operands (f32 accumulation, f32 softmax).
    assert jnp.allclose(out, ref, atol=2e-2, rtol=2e-2)
    # Exact normalization -> each softmax(dim=0) column sums to 1 to f32 precision.
    assert jnp.allclose(jnp.sum(out, axis=0), jnp.ones((FC2,)), atol=1e-3)

    print("KERNEL_OK")
</pallas_src>

<mosaic_0001>
module attributes {stable_mosaic.version = 11 : i64} {
  func.func @policy_kernel(%arg0: i32, %arg1: memref<16x128xbf16, #tpu.memory_space<vmem>>, %arg2: memref<128x128xbf16, #tpu.memory_space<vmem>>, %arg3: memref<1x128xf32, #tpu.memory_space<vmem>>, %arg4: memref<128x128xbf16, #tpu.memory_space<vmem>>, %arg5: memref<1x128xf32, #tpu.memory_space<vmem>>, %arg6: memref<16x128xf32, #tpu.memory_space<vmem>>, %arg7: memref<16x128xbf16, #tpu.memory_space<vmem>>) attributes {dimension_semantics = [#tpu.dimension_semantics<arbitrary>], iteration_bounds = array<i64: 1>, scalar_prefetch = 0 : i64, scratch_operands = 1 : i64, tpu.core_type = #tpu.core_type<tc>, window_params = [{pipeline_mode = #tpu.pipeline_mode<synchronous>, transform_indices = @transform_0, window_bounds = array<i64: 16, 128>}, {pipeline_mode = #tpu.pipeline_mode<synchronous>, transform_indices = @transform_1, window_bounds = array<i64: 128, 128>}, {pipeline_mode = #tpu.pipeline_mode<synchronous>, transform_indices = @transform_2, window_bounds = array<i64: 1, 128>}, {transform_indices = @transform_3, window_bounds = array<i64: 128, 128>}, {transform_indices = @transform_4, window_bounds = array<i64: 1, 128>}, {transform_indices = @transform_5, window_bounds = array<i64: 16, 128>}]} {
    %c0_i32 = arith.constant 0 : i32
    %0 = arith.cmpi eq, %arg0, %c0_i32 : i32
    %1 = arith.extui %0 : i1 to i32
    %c0_i32_0 = arith.constant 0 : i32
    %2 = arith.cmpi ne, %1, %c0_i32_0 : i32
    scf.if %2 {
      %c0_11 = arith.constant 0 : index
      %c0_12 = arith.constant 0 : index
      %24 = vector.load %arg1[%c0_11, %c0_12] : memref<16x128xbf16, #tpu.memory_space<vmem>>, vector<16x128xbf16>
      %c0_13 = arith.constant 0 : index
      %c0_14 = arith.constant 0 : index
      %25 = vector.load %arg2[%c0_13, %c0_14] : memref<128x128xbf16, #tpu.memory_space<vmem>>, vector<128x128xbf16>
      %cst_15 = arith.constant dense<0.000000e+00> : vector<16x128xf32>
      %26 = tpu.matmul %24, %25, %cst_15 {dimension_numbers = #tpu.dot_dimension_numbers<[1], [0], [0], [1], [0, 0, 1, 1], [], []>} : vector<16x128xbf16>, vector<128x128xbf16>, vector<16x128xf32> -> vector<16x128xf32>
      %c0_16 = arith.constant 0 : index
      %c0_17 = arith.constant 0 : index
      %27 = vector.load %arg3[%c0_16, %c0_17] : memref<1x128xf32, #tpu.memory_space<vmem>>, vector<1x128xf32>
      %28 = vector.broadcast %27 : vector<1x128xf32> to vector<16x128xf32>
      %29 = arith.addf %26, %28 : vector<16x128xf32>
      %cst_18 = arith.constant 0.00999999977 : f32
      %30 = vector.broadcast %cst_18 : f32 to vector<16x128xf32>
      %31 = arith.mulf %30, %29 : vector<16x128xf32>
      %32 = arith.maximumf %29, %31 : vector<16x128xf32>
      %33 = arith.truncf %32 : vector<16x128xf32> to vector<16x128xbf16>
      %c0_19 = arith.constant 0 : index
      %c0_20 = arith.constant 0 : index
      %34 = vector.load %arg7[%c0_19, %c0_20] : memref<16x128xbf16, #tpu.memory_space<vmem>>, vector<16x128xbf16>
      tpu.vector_store %arg7[%c0_19, %c0_20], %33 {strides = array<i32>} : memref<16x128xbf16, #tpu.memory_space<vmem>>, vector<16x128xbf16>,
    } else {
    }
    %c0 = arith.constant 0 : index
    %c0_1 = arith.constant 0 : index
    %3 = vector.load %arg7[%c0, %c0_1] : memref<16x128xbf16, #tpu.memory_space<vmem>>, vector<16x128xbf16>
    %c0_2 = arith.constant 0 : index
    %c0_3 = arith.constant 0 : index
    %4 = vector.load %arg4[%c0_2, %c0_3] : memref<128x128xbf16, #tpu.memory_space<vmem>>, vector<128x128xbf16>
    %cst = arith.constant dense<0.000000e+00> : vector<16x128xf32>
    %5 = tpu.matmul %3, %4, %cst {dimension_numbers = #tpu.dot_dimension_numbers<[1], [0], [0], [1], [0, 0, 1, 1], [], []>} : vector<16x128xbf16>, vector<128x128xbf16>, vector<16x128xf32> -> vector<16x128xf32>
    %c0_4 = arith.constant 0 : index
    %c0_5 = arith.constant 0 : index
    %6 = vector.load %arg5[%c0_4, %c0_5] : memref<1x128xf32, #tpu.memory_space<vmem>>, vector<1x128xf32>
    %7 = vector.broadcast %6 : vector<1x128xf32> to vector<16x128xf32>
    %8 = arith.addf %5, %7 : vector<16x128xf32>
    %9 = tpu.iota {dimensions = array<i32: 0>} : vector<16x128xi32>
    %c2_i32 = arith.constant 2 : i32
    %10 = vector.broadcast %c2_i32 : i32 to vector<16x128xi32>
    %11 = arith.cmpi slt, %9, %10 : vector<16x128xi32>
    %cst_6 = arith.constant 0xFF800000 : f32
    %12 = vector.broadcast %cst_6 : f32 to vector<16x128xf32>
    %13 = arith.select %11, %8, %12 : vector<16x128xi1>, vector<16x128xf32>
    %cst_7 = arith.constant dense<0xFF800000> : vector<128xf32>
    %14 = vector.multi_reduction <maximumf>, %13, %cst_7 [0] : vector<16x128xf32> to vector<128xf32>
    %15 = vector.shape_cast %14 : vector<128xf32> to vector<1x128xf32>
    %16 = vector.broadcast %15 : vector<1x128xf32> to vector<16x128xf32>
    %17 = arith.subf %13, %16 : vector<16x128xf32>
    %18 = math.exp %17 : vector<16x128xf32>
    %cst_8 = arith.constant dense<0.000000e+00> : vector<128xf32>
    %19 = vector.multi_reduction <add>, %18, %cst_8 [0] : vector<16x128xf32> to vector<128xf32>
    %20 = vector.shape_cast %19 : vector<128xf32> to vector<1x128xf32>
    %21 = vector.broadcast %20 : vector<1x128xf32> to vector<16x128xf32>
    %22 = arith.divf %18, %21 : vector<16x128xf32>
    %c0_9 = arith.constant 0 : index
    %c0_10 = arith.constant 0 : index
    %23 = vector.load %arg6[%c0_9, %c0_10] : memref<16x128xf32, #tpu.memory_space<vmem>>, vector<16x128xf32>
    tpu.vector_store %arg6[%c0_9, %c0_10], %22 {strides = array<i32>} : memref<16x128xf32, #tpu.memory_space<vmem>>, vector<16x128xf32>,
    return
  }
  func.func @transform_0(%arg0: i32) -> (i32, i32) {
    %c0_i32 = arith.constant 0 : i32
    %c0_i32_0 = arith.constant 0 : i32
    %c0_i32_1 = arith.constant 0 : i32
    return %c0_i32, %c0_i32_0 : i32, i32
  }
  func.func @transform_1(%arg0: i32) -> (i32, i32) {
    %c0_i32 = arith.constant 0 : i32
    %c0_i32_0 = arith.constant 0 : i32
    %c0_i32_1 = arith.constant 0 : i32
    return %c0_i32, %c0_i32_0 : i32, i32
  }
  func.func @transform_2(%arg0: i32) -> (i32, i32) {
    %c0_i32 = arith.constant 0 : i32
    %c0_i32_0 = arith.constant 0 : i32
    %c0_i32_1 = arith.constant 0 : i32
    return %c0_i32, %c0_i32_0 : i32, i32
  }
  func.func @transform_3(%arg0: i32) -> (i32, i32) {
    %c0_i32 = arith.constant 0 : i32
    %c0_i32_0 = arith.constant 0 : i32
    return %c0_i32, %arg0 : i32, i32
  }
  func.func @transform_4(%arg0: i32) -> (i32, i32) {
    %c0_i32 = arith.constant 0 : i32
    %c0_i32_0 = arith.constant 0 : i32
    return %c0_i32, %arg0 : i32, i32
  }
  func.func @transform_5(%arg0: i32) -> (i32, i32) {
    %c0_i32 = arith.constant 0 : i32
    %c0_i32_0 = arith.constant 0 : i32
    return %c0_i32, %arg0 : i32, i32
  }
}

</mosaic_0001>

<bundles_post_ra>
// kernel: forward.1
= control target key start
LH: loop header
LB: loop body
LE: loop exit
PB: predicated region body
PF: predicated region fallthrough
CT: control target
= control target key end

     0   :  { %10 = vsyncpa [#allocation4], 0  ;;  %s563_s0 = inlined_call_operand.vmem [shape: bf16[16,128], index: 0, kind: input, shape index: {}]   ;;  %s564_s1 = inlined_call_operand.hbm [shape: bf16[128,128], index: 1, kind: input, shape index: {}]   ;;  %s565_s2 = inlined_call_operand.vmem [shape: f32[1,128], index: 2, kind: input, shape index: {}]   ;;  %s566_s3 = inlined_call_operand.hbm [shape: bf16[128,128], index: 3, kind: input, shape index: {}]   ;;  %s567_s4 = inlined_call_operand.vmem [shape: f32[1,128], index: 4, kind: input, shape index: {}]   ;;  %s568_s5 = inlined_call_operand.vmem [shape: f32[16,128], index: 5, kind: output, shape index: {}]  }
   0x1   :  { %11 = vsyncpa [#allocation6], 0  ;;  %s506_s18 = smov [#allocation3]  }
   0x2   :  { %s19_s19 = sshll.u32 %s506_s18, 4  ;;  %s20_s19 = int_to_ptr.vmem [resolvable:$true] %s19_s19 }
   0x3   :  { %s470_s20 = scalar_lea.vmem %s20_s19, 1024  ;;  %p475_p1 = scmp.lt.s32.totalorder %s20_s19, %s20_s19 }
   0x4   :  { %p471_p0 = scmp.ne.s32.totalorder %s20_s19, %s470_s20  ;;  %p476_p2 = scmp.lt.s32.totalorder %s470_s20, %s470_s20 }
   0x6   :  { %p477_p3 = por %p476_p2, %p475_p1 }
   0x8   :  { %p478_p4 = pnand %p477_p3, %p471_p0 }
   0xa   :  { %481 = shalt.err (!%p478_p4)
}
   0xb   :  { %s507_s21 = smov 64   ;;  %s508_s22 = smov 4  }
   0xc   :  { %25 = dma.hbm_to_vmem [thread:$0]  %s564_s1, 1024, %s20_s19, [#allocation4], %s507_s21, %s507_s21, %s508_s22  }
   0xd   :  { %s509_s25 = smov [#allocation5]  }
   0xe   :  { %s33_s26 = sshll.u32 %s509_s25, 4  ;;  %s34_s26 = int_to_ptr.vmem [resolvable:$true] %s33_s26 }
   0xf   :  { %s490_s27 = scalar_lea.vmem %s34_s26, 1024  ;;  %p495_p6 = scmp.lt.s32.totalorder %s34_s26, %s34_s26 }
  0x10   :  { %p491_p5 = scmp.ne.s32.totalorder %s34_s26, %s490_s27  ;;  %p496_p7 = scmp.lt.s32.totalorder %s490_s27, %s490_s27 }
  0x12   :  { %p497_p8 = por %p496_p7, %p495_p6 }
  0x14   :  { %p498_p9 = pnand %p497_p8, %p491_p5 }
  0x16   :  { %501 = shalt.err (!%p498_p9)
}
  0x17   :  { %39 = dma.hbm_to_vmem [thread:$0]  %s566_s3, 1024, %s34_s26, [#allocation6], %s507_s21, %s507_s21, %s508_s22  }
  0x18   :  { %502 = dma.done.wait [#allocation4], 1024  }
  0x19   :  { %503 = vsyncadd [#allocation4], 4294966272 }
  0x1a   :  { %504 = dma.done.wait [#allocation6], 1024  }
  0x1b   :  { %505 = vsyncadd [#allocation6], 4294966272  ;;  %v510_v0 = vmov 0.0   ;;  %vm511_vm0 = vmmov 0   ;;  %v438_v1 = vld [vmem:[#allocation3 + $0x38] sm:$0xff]   ;;  %v439_v2 = vld [vmem:[#allocation3 + $0x30] sm:$0xff]   ;;  %v307_v31 = vlaneseq }
  0x1c   :  { %392 = vmatprep.subr.bf16.mxu0 %v510_v0  ;;  %408 = vmatprep.mubr.msk.bf16.mxu0 %vm511_vm0, %v510_v0  ;;  %v440_v3 = vld [vmem:[#allocation3 + $0x28] sm:$0xff]   ;;  %v447_v4 = vld [vmem:[#allocation5 + $0x38] sm:$0xff]   ;;  %v441_v5 = vld [vmem:[#allocation3 + $0x20] sm:$0xff]  }
  0x1d   :  { %412 = vmatprep.subr.bf16.mxu1 %v510_v0  ;;  %428 = vmatprep.mubr.msk.bf16.mxu1 %vm511_vm0, %v510_v0  ;;  %v448_v6 = vld [vmem:[#allocation5 + $0x30] sm:$0xff]   ;;  %v442_v7 = vld [vmem:[#allocation3 + $0x18] sm:$0xff]   ;;  %v444_v9 = vld [vmem:[#allocation3 + $0x8] sm:$0xff]   ;;  %v308_v32 = vshrl.u32 %v307_v31, 7 }
  0x1e   :  { %393 = vmatpush3.bf16.msra.mxu0 %v438_v1  ;;  %413 = vmatpush3.bf16.msra.mxu1 %v447_v4  ;;  %v443_v8 = vld [vmem:[#allocation3 + $0x10] sm:$0xff]   ;;  %v445_v10 = vld [vmem:[#allocation3] sm:$0xff]   ;;  %v446_v11 = vld [vmem:[%s563_s0] sm:$0xff]  }
  0x1f   :  { %394 = vmatprep.subr.bf16.mxu0 %v510_v0  ;;  %414 = vmatprep.subr.bf16.mxu1 %v510_v0  ;;  %v449_v12 = vld [vmem:[#allocation5 + $0x28] sm:$0xff]   ;;  %v450_v13 = vld [vmem:[#allocation5 + $0x20] sm:$0xff]   ;;  %v451_v14 = vld [vmem:[#allocation5 + $0x18] sm:$0xff]   ;;  %vm310_vm1 = vcmp.lt.s32.totalorder %v308_v32, 2 }
  0x20   :  { %v452_v15 = vld [vmem:[#allocation5 + $0x10] sm:$0xff]   ;;  %v453_v16 = vld [vmem:[#allocation5 + $0x8] sm:$0xff]   ;;  %v454_v17 = vld [vmem:[#allocation5] sm:$0xff]  }
  0x21   :  { %v345_v18 = vld [vmem:[%s565_s2] ss:$0 sm:$0xff] }
  0x22   :  { %395 = vmatpush3.bf16.msra.mxu0 %v439_v2  ;;  %415 = vmatpush3.bf16.msra.mxu1 %v448_v6  ;;  %v357_v33 = vld [vmem:[%s567_s4] ss:$0 sm:$0xff] }
  0x23   :  { %396 = vmatprep.subr.bf16.mxu0 %v510_v0  ;;  %416 = vmatprep.subr.bf16.mxu1 %v510_v0 }
  0x26   :  { %397 = vmatpush3.bf16.msra.mxu0 %v440_v3  ;;  %417 = vmatpush3.bf16.msra.mxu1 %v449_v12 }
  0x27   :  { %398 = vmatprep.subr.bf16.mxu0 %v510_v0  ;;  %418 = vmatprep.subr.bf16.mxu1 %v510_v0 }
  0x2a   :  { %399 = vmatpush3.bf16.msra.mxu0 %v441_v5  ;;  %419 = vmatpush3.bf16.msra.mxu1 %v450_v13 }
  0x2b   :  { %400 = vmatprep.subr.bf16.mxu0 %v510_v0  ;;  %420 = vmatprep.subr.bf16.mxu1 %v510_v0 }
  0x2e   :  { %401 = vmatpush3.bf16.msra.mxu0 %v442_v7  ;;  %421 = vmatpush3.bf16.msra.mxu1 %v451_v14 }
  0x2f   :  { %402 = vmatprep.subr.bf16.mxu0 %v510_v0  ;;  %422 = vmatprep.subr.bf16.mxu1 %v510_v0 }
  0x32   :  { %403 = vmatpush3.bf16.msra.mxu0 %v443_v8  ;;  %423 = vmatpush3.bf16.msra.mxu1 %v452_v15 }
  0x33   :  { %404 = vmatprep.subr.bf16.mxu0 %v510_v0  ;;  %424 = vmatprep.subr.bf16.mxu1 %v510_v0 }
  0x36   :  { %405 = vmatpush3.bf16.msra.mxu0 %v444_v9  ;;  %425 = vmatpush3.bf16.msra.mxu1 %v453_v16 }
  0x37   :  { %406 = vmatprep.subr.bf16.mxu0 %v510_v0  ;;  %426 = vmatprep.subr.bf16.mxu1 %v510_v0 }
  0x3a   :  { %407 = vmatpush3.bf16.msra.mxu0 %v445_v10  ;;  %427 = vmatpush3.bf16.msra.mxu1 %v454_v17 }
  0x3d   :  { %409 = vmatmul.mubr.bf16.vlgmr.msra.gmra.mxu0 %v446_v11 }
  0xfd   :  { %v166_v19 = vpop.f32.mrf.mxu0 }
  0xfe   :  { %v167_v20 = vadd.f32 %v345_v18, %v166_v19 }
  0xff   :  { %v410_v21 = vpop.f32.mrf.mxu0 }
 0x100   :  { %v173_v23 = vmul.f32 0.01, %v167_v20 }
 0x101   :  { %v169_v22 = vpop.f32.mrf.mxu0 }
 0x102   :  { %v170_v24 = vadd.f32 %v345_v18, %v169_v22  ;;  %v175_v27 = vmax.f32 %v167_v20, %v173_v23 }
 0x103   :  { %v411_v25 = vpop.f32.mrf.mxu0 }
 0x104   :  { %v174_v26 = vmul.f32 0.01, %v170_v24 }
 0x106   :  { %v176_v28 = vmax.f32 %v170_v24, %v174_v26 }
 0x108   :  { %v372_v29 = vpack.c.bf16 %v176_v28, %v175_v27 }
 0x10a   :  { %373 = vst [vmem:[#allocation2] sm:$0xff] %v372_v29  }
 0x111   :  { %v455_v30 = vld [vmem:[#allocation2] sm:$0xff]  }
 0x112   :  { %429 = vmatmul.mubr.bf16.vlgmr.msra.gmra.mxu1 %v455_v30 }
 0x1d2   :  { %v300_v34 = vpop.f32.mrf.mxu1 }
 0x1d3   :  { %v301_v35 = vadd.f32 %v357_v33, %v300_v34 }
 0x1d4   :  { %v430_v36 = vpop.f32.mrf.mxu1 }
 0x1d5   :  { %v312_v37 = vsel %vm310_vm1, %v301_v35, -inf }
 0x1d6   :  { %v315_v38 = vrot.slane %v312_v37, 4  ;;  %v303_v39 = vpop.f32.mrf.mxu1 }
 0x1d8   :  { %v316_v40 = vmax.f32 %v312_v37, %v315_v38  ;;  %v431_v41 = vpop.f32.mrf.mxu1 }
 0x1da   :  { %v317_v42 = vrot.slane %v316_v40, 2 }
 0x1dc   :  { %v318_v43 = vmax.f32 %v316_v40, %v317_v42 }
 0x1de   :  { %v319_v44 = vrot.slane %v318_v43, 1 }
 0x1e0   :  { %v320_v45 = vmax.f32 %v318_v43, %v319_v44 }
 0x1e2   :  { %v321_v46 = vsub.f32 %v312_v37, %v320_v45  ;;  %v322_v47 = vsub.f32 -inf, %v320_v45 }
 0x1e4   :  { %v323_v48 = vmul.f32 1.442695, %v321_v46  ;;  %v325_v49 = vmul.f32 1.442695, %v322_v47 }
 0x1e6   :  { %456 = vpow2.f32 %v323_v48 }
 0x1e7   :  { %458 = vpow2.f32 %v325_v49 }
 0x1f3   :  { %v457_v50 = vpop.eup %456 }
 0x1f4   :  { %v459_v51 = vpop.eup %458 }
 0x1f5   :  { %v327_v52 = vadd.f32 %v459_v51, %v457_v50 }
 0x1f7   :  { %v328_v53 = vrot.slane %v327_v52, 4 }
 0x1f9   :  { %v329_v54 = vadd.f32 %v328_v53, %v327_v52 }
 0x1fb   :  { %v330_v55 = vrot.slane %v329_v54, 2 }
 0x1fd   :  { %v331_v56 = vadd.f32 %v330_v55, %v329_v54 }
 0x1ff   :  { %v332_v57 = vrot.slane %v331_v56, 1 }
 0x201   :  { %v333_v58 = vadd.f32 %v332_v57, %v331_v56 }
 0x203   :  { %460 = vrcp.f32 %v333_v58 }
 0x210   :  { %v461_v59 = vpop.eup %460 }
 0x211   :  { %v335_v60 = vmul.f32 %v461_v59, %v457_v50  ;;  %v336_v61 = vmul.f32 %v461_v59, %v459_v51 }
 0x213   :  { %337 = vst [vmem:[%s568_s5] sm:$0xff] %v335_v60  ;;  %338 = vst [vmem:[%s568_s5 + $0x8] sm:$0xff] %v336_v61 }
 0x214   :  { %343 = vsyncpa [#allocation4], 1 }
 0x215   :  { %344 = vsyncpa [#allocation6], 1 }

</bundles_post_ra>
